<compile_context>
chip_gen: v5e
topology: v5e:2x2
jax: 0.10.0
libtpu: 0.0.40
codegen_flags: <defaults>
</compile_context>

<pallas_src>
import math

import jax
import jax.numpy as jnp
from jax.experimental import pallas as pl
from jax.experimental.pallas import tpu as pltpu


# ----------------------------- Pallas kernel ------------------------------- #
def pe_add_kernel(x_ref, pe_ref, out_ref):
    # x_ref:  (tb, S*D) tile of the flattened activations
    # pe_ref: (1,  S*D) flattened positional-encoding rows (constant index_map
    #         -> fetched once, resident for the whole grid, broadcast over rows)
    out_ref[...] = x_ref[...] + pe_ref[...]


# --------------------------- table construction ---------------------------- #
def sinusoidal_table(max_len, d_model):
    """Sinusoidal table identical to the PyTorch buffer, shape (max_len, d_model)."""
    assert d_model % 2 == 0, "even d_model required (matches PyTorch reference)"
    pos = jnp.arange(max_len, dtype=jnp.float32)[:, None]
    div = jnp.exp(jnp.arange(0, d_model, 2, dtype=jnp.float32)
                  * (-math.log(10000.0) / d_model))
    pe = jnp.zeros((max_len, d_model), jnp.float32)
    pe = pe.at[:, 0::2].set(jnp.sin(pos * div))
    pe = pe.at[:, 1::2].set(jnp.cos(pos * div))
    return pe


# ------------------------------ tile sizing -------------------------------- #
_STEP_BYTES = 4 << 20     # target ~4 MiB of x per grid step (amortize pipeline overhead)
_VMEM_BUDGET = 10 << 20   # x(2 bufs) + out(2 bufs) budget; safe on v5e/v6e/v7x defaults


def _choose_row_tile(B, row_bytes):
    target = max(1, _STEP_BYTES // max(row_bytes, 1))
    fit = max(1, _VMEM_BUDGET // max(4 * row_bytes, 1))
    tb = min(B, target, fit)
    if tb >= B:
        return B                           # full dim -> (8,128) rule satisfied
    return min(B, max(8, (tb // 8) * 8))   # multiple of 8 for sublane alignment


# --------------------------------- module ---------------------------------- #
class PositionalEncoding:
    def __init__(self, d_model, max_len=5000):
        self.d_model = d_model
        self.max_len = max_len
        self.pe = sinusoidal_table(max_len, d_model)      # (max_len, d_model) f32
        self._pe_slab_cache = {}                          # (S, dtype) -> (1, S*D) slab

    def _pe_slab(self, S, dtype):
        key = (S, jnp.dtype(dtype).name)
        slab = self._pe_slab_cache.get(key)
        if slab is None:
            slab = jnp.asarray(self.pe[:S].reshape(1, S * self.d_model), dtype=dtype)
            self._pe_slab_cache[key] = slab
        return slab

    def __call__(self, x, *, row_tile=None):
        """x: (B, S, D). row_tile (testing override) must be a multiple of 8 or >= B."""
        B, S, D = x.shape
        assert D == self.d_model and S <= self.max_len
        SD = S * D
        x2 = x.reshape(B, SD)                       # lane-dense slab (layout only)
        pe2 = self._pe_slab(S, x.dtype)             # precomputed, cached at init

        row_bytes = SD * x.dtype.itemsize
        tb = min(B, row_tile) if row_tile is not None else _choose_row_tile(B, row_bytes)
        grid = (pl.cdiv(B, tb),)

        # Raise the scoped VMEM limit only if the blocks would not fit the
        # smallest default (v5e: 16 MiB). Capped well under v7x's 64 MiB part.
        need = 4 * tb * row_bytes + 2 * row_bytes
        params = dict(dimension_semantics=("parallel",))
        if need > (12 << 20):
            params["vmem_limit_bytes"] = int(min(need * 3 // 2, 48 << 20))

        out2 = pl.pallas_call(
            pe_add_kernel,
            out_shape=jax.ShapeDtypeStruct((B, SD), x.dtype),
            grid=grid,
            in_specs=[
                pl.BlockSpec((tb, SD), lambda i: (i, 0)),   # x rows, pipelined
                pl.BlockSpec((1, SD), lambda i: (0, 0)),    # pe, resident
            ],
            out_specs=pl.BlockSpec((tb, SD), lambda i: (i, 0)),
            input_output_aliases={0: 0},                    # out reuses x's buffer
            compiler_params=pltpu.CompilerParams(**params),
        )(x2, pe2)
        return out2.reshape(B, S, D)


# ---------------------------------- demo ----------------------------------- #
if __name__ == "__main__":
    D_MODEL = 6
    module = PositionalEncoding(D_MODEL, max_len=5000)

    # 1) Spec-sized demo (B=2, S=8): single full block, grid=(1,).
    x = jax.random.normal(jax.random.PRNGKey(0), (2, 8, D_MODEL), dtype=jnp.float32)
    y = module(x)
    jax.block_until_ready(y)
    y_ref = x + module.pe[None, :8, :]
    assert y.shape == x.shape and y.dtype == x.dtype
    assert bool(jnp.all(jnp.isfinite(y)))
    assert bool(jnp.allclose(y, y_ref, atol=1e-6, rtol=1e-6))

    # 2) Gridded path: B=20 rows, 8-row tiles -> grid=(3,) with a partial last
    #    tile, resident pe block, parallel grid axis; S*D = 384 is a multiple
    #    of 128 so every store is an unmasked lane-dense vst.
    x2 = jax.random.normal(jax.random.PRNGKey(1), (20, 64, D_MODEL), dtype=jnp.float32)
    y2 = module(x2, row_tile=8)
    jax.block_until_ready(y2)
    y2_ref = x2 + module.pe[None, :64, :]
    assert bool(jnp.allclose(y2, y2_ref, atol=1e-6, rtol=1e-6))

    print("KERNEL_OK")
</pallas_src>

<mosaic_0001>
module attributes {stable_mosaic.version = 11 : i64} {
  func.func @pe_add_kernel(%arg0: i32, %arg1: memref<2x48xf32, #tpu.memory_space<vmem>>, %arg2: memref<1x48xf32, #tpu.memory_space<vmem>>, %arg3: memref<2x48xf32, #tpu.memory_space<vmem>>) attributes {dimension_semantics = [#tpu.dimension_semantics<parallel>], iteration_bounds = array<i64: 1>, scalar_prefetch = 0 : i64, scratch_operands = 0 : i64, tpu.core_type = #tpu.core_type<tc>, window_params = [{transform_indices = @transform_0, window_bounds = array<i64: 2, 48>}, {pipeline_mode = #tpu.pipeline_mode<synchronous>, transform_indices = @transform_1, window_bounds = array<i64: 1, 48>}, {transform_indices = @transform_2, window_bounds = array<i64: 2, 48>}]} {
    %c0 = arith.constant 0 : index
    %c0_0 = arith.constant 0 : index
    %0 = vector.load %arg1[%c0, %c0_0] : memref<2x48xf32, #tpu.memory_space<vmem>>, vector<2x48xf32>
    %c0_1 = arith.constant 0 : index
    %c0_2 = arith.constant 0 : index
    %1 = vector.load %arg2[%c0_1, %c0_2] : memref<1x48xf32, #tpu.memory_space<vmem>>, vector<1x48xf32>
    %2 = vector.broadcast %1 : vector<1x48xf32> to vector<2x48xf32>
    %3 = arith.addf %0, %2 : vector<2x48xf32>
    %c0_3 = arith.constant 0 : index
    %c0_4 = arith.constant 0 : index
    %4 = vector.load %arg3[%c0_3, %c0_4] : memref<2x48xf32, #tpu.memory_space<vmem>>, vector<2x48xf32>
    tpu.vector_store %arg3[%c0_3, %c0_4], %3 {strides = array<i32>} : memref<2x48xf32, #tpu.memory_space<vmem>>, vector<2x48xf32>,
    return
  }
  func.func @transform_0(%arg0: i32) -> (i32, i32) {
    %c0_i32 = arith.constant 0 : i32
    %c0_i32_0 = arith.constant 0 : i32
    return %arg0, %c0_i32 : i32, i32
  }
  func.func @transform_1(%arg0: i32) -> (i32, i32) {
    %c0_i32 = arith.constant 0 : i32
    %c0_i32_0 = arith.constant 0 : i32
    %c0_i32_1 = arith.constant 0 : i32
    return %c0_i32, %c0_i32_0 : i32, i32
  }
  func.func @transform_2(%arg0: i32) -> (i32, i32) {
    %c0_i32 = arith.constant 0 : i32
    %c0_i32_0 = arith.constant 0 : i32
    return %arg0, %c0_i32 : i32, i32
  }
}

</mosaic_0001>

<bundles_post_ra>
// kernel: tpu_custom_call.1
= control target key start
LH: loop header
LB: loop body
LE: loop exit
PB: predicated region body
PF: predicated region fallthrough
CT: control target
= control target key end

     0   :  { %7 = vsyncpa [#allocation3], 0  ;;  %s132_s0 = inlined_call_operand.hbm [shape: f32[2,48], index: 0, kind: input, shape index: {}, may-alias: {0,2}]   ;;  %s133_s1 = inlined_call_operand.vmem [shape: f32[1,48], index: 1, kind: input, shape index: {}]   ;;  %s134_s2 = inlined_call_operand.hbm [shape: f32[2,48], index: 2, kind: output, shape index: {}, may-alias: {0,2}]  }
   0x1   :  { %8 = vsyncpa [#allocation4], 0  ;;  %s14_s11 = sshll.u32 %s132_s0, 4  ;;  %s106_s12 = smov [#allocation2]   ;;  %s15_s11 = int_to_ptr.hbm [resolvable:$true] %s14_s11 }
   0x2   :  { %s16_s13 = sshll.u32 %s106_s12, 4  ;;  %s17_s13 = int_to_ptr.vmem [resolvable:$true] %s16_s13 }
   0x3   :  { %19 = dma.hbm_to_vmem [thread:$0]  %s15_s11, 32, %s17_s13, [#allocation3]  }
   0x4   :  { %102 = dma.done.wait [#allocation3], 32  }
   0x5   :  { %103 = vsyncadd [#allocation3], 4294967264  ;;  %s107_s14 = smov [#allocation5]   ;;  %s41_s18 = sshll.u32 %s134_s2, 4  ;;  %v26_v0 = vld [vmem:[#allocation2] sm:$0x3]  ;;  %s42_s18 = int_to_ptr.hbm [resolvable:$true] %s41_s18 }
   0x6   :  { %s39_s15 = sshll.u32 %s107_s14, 4  ;;  %v53_v1 = vld [vmem:[%s133_s1] ss:$0 sm:$0xff]  ;;  %vm32_vm0 = vcmask 386048   ;;  %s40_s15 = int_to_ptr.vmem [resolvable:$true] %s39_s15 }
   0x7   :  { %v31_v2 = vadd.f32 %v53_v1, %v26_v0 }
   0x9   :  { %33 = vst.msk [vmem:[#allocation5] sm:$0x3] %vm32_vm0, %v31_v2 }
   0xa   :  { %44 = dma.vmem_to_hbm [thread:$0]  %s40_s15, 32, %s42_s18, [#allocation4]  }
   0xb   :  { %104 = dma.done.wait [#allocation4], 32  }
   0xc   :  { %105 = vsyncadd [#allocation4], 4294967264 }
   0xd   :  { %49 = vsyncpa [#allocation3], 1 }
   0xe   :  { %50 = vsyncpa [#allocation4], 1 }

</bundles_post_ra>
